<compile_context>
chip_gen: v7x
topology: tpu7x:2x2x1
jax: 0.10.0
libtpu: 0.0.40
codegen_flags: <defaults>
</compile_context>

<pallas_src>
import jax
import jax.numpy as jnp
from jax.experimental import pallas as pl
from jax.experimental.pallas import tpu as pltpu


def _leaky_relu(x, negative_slope=0.01):
    # torch.nn.LeakyReLU() default negative_slope = 0.01
    return jnp.where(x > 0, x, negative_slope * x)


def _round_up(n, m):
    return (n + m - 1) // m * m


def similarity_kernel(xt_ref, iou_ref,
                      w1_ref, b1_ref, w2_ref, b2_ref, w3_ref, b3_ref,
                      out_ref):
    """One batch tile (batch on the lane axis).

    xt_ref : [2F, TB] bf16     iou_ref : [1, TB] f32
    w1_ref : [H1, 2F] bf16     b1_ref  : [H1, 1] f32
    w2_ref : [H2, H1] bf16     b2_ref  : [H2, 1] f32
    w3_ref : [H2, 1]  f32      b3_ref  : [1, 1]  f32
    out_ref: [1, TB]  f32
    """
    xt = xt_ref[...]                                            # [2F, TB] bf16

    # fc1 + LeakyReLU   (MXU, f32 accumulate, f32 epilogue)
    h1 = jnp.dot(w1_ref[...], xt, preferred_element_type=jnp.float32)
    h1 = h1 + b1_ref[...]                                       # [H1, TB]
    r1 = _leaky_relu(h1)

    # fc2 + LeakyReLU
    h2 = jnp.dot(w2_ref[...], r1.astype(jnp.bfloat16),
                 preferred_element_type=jnp.float32)
    h2 = h2 + b2_ref[...]                                       # [H2, TB]
    r2 = _leaky_relu(h2)

    # fc3: single output unit -> VPU multiply + sublane reduce (keeps MXU free,
    # output stays lane-dense [1, TB]).
    h3 = jnp.sum(r2 * w3_ref[...], axis=0, keepdims=True) + b3_ref[...]

    # sigmoid via EUP exp + approx reciprocal, then IoU add.
    sig = pl.reciprocal(1.0 + jnp.exp(-h3), approx=True)
    out_ref[...] = sig + iou_ref[...]                           # [1, TB]


def similarity_forward(x, iou, params, *, block_b=512):
    """x: [B, 2*n_factors], iou: [B, 1]; params in PyTorch Linear layout.

    Returns [B, 1] f32.
    """
    B, F2 = x.shape
    H1 = params["w1"].shape[0]          # n_factors
    H2 = params["w2"].shape[0]          # n_factors // 2

    # Lane tile (multiple of 128); pad batch so the grid divides evenly.
    tb = min(block_b, _round_up(B, 128))
    Bp = _round_up(B, tb)
    pad = Bp - B
    x_p = jnp.pad(x.astype(jnp.float32), ((0, pad), (0, 0))) if pad else x.astype(jnp.float32)
    iou_p = jnp.pad(iou.astype(jnp.float32), ((0, pad), (0, 0))) if pad else iou.astype(jnp.float32)

    # Batch-on-lanes: features on sublanes, batch on lanes. bf16 for the MXU path.
    xt = x_p.T.astype(jnp.bfloat16)                     # [2F, Bp]
    iout = iou_p.T                                      # [1, Bp] f32

    w1 = params["w1"].astype(jnp.bfloat16)              # [H1, 2F]
    w2 = params["w2"].astype(jnp.bfloat16)              # [H2, H1]
    b1 = params["b1"].astype(jnp.float32).reshape(H1, 1)
    b2 = params["b2"].astype(jnp.float32).reshape(H2, 1)
    w3 = params["w3"].astype(jnp.float32).reshape(H2, 1)  # column for VPU reduce
    b3 = params["b3"].astype(jnp.float32).reshape(1, 1)

    grid = (Bp // tb,)
    stream = lambda i: (0, i)        # x / iou / out tiles advance along lanes
    resident = lambda i: (0, 0)      # weights/biases stay put across grid steps

    out_t = pl.pallas_call(
        similarity_kernel,
        out_shape=jax.ShapeDtypeStruct((1, Bp), jnp.float32),
        grid=grid,
        in_specs=[
            pl.BlockSpec((F2, tb), stream),     # xt
            pl.BlockSpec((1, tb), stream),      # iou
            pl.BlockSpec((H1, F2), resident),   # w1
            pl.BlockSpec((H1, 1), resident),    # b1
            pl.BlockSpec((H2, H1), resident),   # w2
            pl.BlockSpec((H2, 1), resident),    # b2
            pl.BlockSpec((H2, 1), resident),    # w3 (column)
            pl.BlockSpec((1, 1), resident),     # b3
        ],
        out_specs=pl.BlockSpec((1, tb), stream),
        compiler_params=pltpu.CompilerParams(
            dimension_semantics=("parallel",)),
    )(xt, iout, w1, b1, w2, b2, w3, b3)

    return out_t[:, :B].T                                # [B, 1] f32


def init_params(n_factors=32, seed=0):
    """Deterministic init mirroring nn.Linear defaults, PyTorch [out, in] layout."""
    key = jax.random.PRNGKey(seed)
    ks = jax.random.split(key, 6)

    def lin(kw, kb, fan_in, fan_out):
        bound = float(fan_in) ** -0.5
        w = jax.random.uniform(kw, (fan_out, fan_in), jnp.float32, -bound, bound)
        b = jax.random.uniform(kb, (fan_out,), jnp.float32, -bound, bound)
        return w, b

    w1, b1 = lin(ks[0], ks[1], 2 * n_factors, n_factors)
    w2, b2 = lin(ks[2], ks[3], n_factors, n_factors // 2)
    w3, b3 = lin(ks[4], ks[5], n_factors // 2, 1)
    return {"w1": w1, "b1": b1, "w2": w2, "b2": b2, "w3": w3, "b3": b3}


def reference_forward(x, iou, p):
    """Pure-JAX f32 reference of the PyTorch forward."""
    h1 = _leaky_relu(x @ p["w1"].T + p["b1"])
    h2 = _leaky_relu(h1 @ p["w2"].T + p["b2"])
    mlp = h2 @ p["w3"].T + p["b3"]
    return jax.nn.sigmoid(mlp) + iou


if __name__ == "__main__":
    n_factors = 32
    B = 8
    key = jax.random.PRNGKey(0)
    kx, kiou = jax.random.split(key)

    x = jax.random.normal(kx, (B, 2 * n_factors), jnp.float32)
    iou = jax.random.uniform(kiou, (B, 1), jnp.float32)

    params = init_params(n_factors=n_factors, seed=0)

    out = similarity_forward(x, iou, params)
    out = jax.block_until_ready(out)

    ref = reference_forward(x, iou, params)
    assert out.shape == (B, 1), out.shape
    max_err = float(jnp.max(jnp.abs(out - ref)))
    # bf16 matmuls + approx-reciprocal sigmoid vs pure-f32 reference.
    assert max_err < 2e-2, f"mismatch vs JAX reference: max abs err {max_err}"

    print("KERNEL_OK")
</pallas_src>

<mosaic_0001>
module attributes {stable_mosaic.version = 11 : i64} {
  func.func @similarity_kernel(%arg0: i32, %arg1: memref<64x128xbf16, #tpu.memory_space<vmem>>, %arg2: memref<1x128xf32, #tpu.memory_space<vmem>>, %arg3: memref<32x64xbf16, #tpu.memory_space<vmem>>, %arg4: memref<32x1xf32, #tpu.memory_space<vmem>>, %arg5: memref<16x32xbf16, #tpu.memory_space<vmem>>, %arg6: memref<16x1xf32, #tpu.memory_space<vmem>>, %arg7: memref<16x1xf32, #tpu.memory_space<vmem>>, %arg8: memref<1x1xf32, #tpu.memory_space<vmem>>, %arg9: memref<1x128xf32, #tpu.memory_space<vmem>>) attributes {dimension_semantics = [#tpu.dimension_semantics<parallel>], iteration_bounds = array<i64: 1>, scalar_prefetch = 0 : i64, scratch_operands = 0 : i64, tpu.core_type = #tpu.core_type<tc>, window_params = [{transform_indices = @transform_0, window_bounds = array<i64: 64, 128>}, {transform_indices = @transform_1, window_bounds = array<i64: 1, 128>}, {pipeline_mode = #tpu.pipeline_mode<synchronous>, transform_indices = @transform_2, window_bounds = array<i64: 32, 64>}, {pipeline_mode = #tpu.pipeline_mode<synchronous>, transform_indices = @transform_3, window_bounds = array<i64: 32, 1>}, {pipeline_mode = #tpu.pipeline_mode<synchronous>, transform_indices = @transform_4, window_bounds = array<i64: 16, 32>}, {pipeline_mode = #tpu.pipeline_mode<synchronous>, transform_indices = @transform_5, window_bounds = array<i64: 16, 1>}, {pipeline_mode = #tpu.pipeline_mode<synchronous>, transform_indices = @transform_6, window_bounds = array<i64: 16, 1>}, {pipeline_mode = #tpu.pipeline_mode<synchronous>, transform_indices = @transform_7, window_bounds = array<i64: 1, 1>}, {transform_indices = @transform_8, window_bounds = array<i64: 1, 128>}]} {
    %c0 = arith.constant 0 : index
    %c0_0 = arith.constant 0 : index
    %0 = vector.load %arg1[%c0, %c0_0] : memref<64x128xbf16, #tpu.memory_space<vmem>>, vector<64x128xbf16>
    %c0_1 = arith.constant 0 : index
    %c0_2 = arith.constant 0 : index
    %1 = vector.load %arg3[%c0_1, %c0_2] : memref<32x64xbf16, #tpu.memory_space<vmem>>, vector<32x64xbf16>
    %cst = arith.constant dense<0.000000e+00> : vector<32x128xf32>
    %2 = tpu.matmul %1, %0, %cst {dimension_numbers = #tpu.dot_dimension_numbers<[1], [0], [0], [1], [0, 0, 1, 1], [], []>} : vector<32x64xbf16>, vector<64x128xbf16>, vector<32x128xf32> -> vector<32x128xf32>
    %c0_3 = arith.constant 0 : index
    %c0_4 = arith.constant 0 : index
    %3 = vector.load %arg4[%c0_3, %c0_4] : memref<32x1xf32, #tpu.memory_space<vmem>>, vector<32x1xf32>
    %4 = vector.broadcast %3 : vector<32x1xf32> to vector<32x128xf32>
    %5 = arith.addf %2, %4 : vector<32x128xf32>
    %cst_5 = arith.constant 0.000000e+00 : f32
    %6 = vector.broadcast %cst_5 : f32 to vector<32x128xf32>
    %7 = arith.cmpf ogt, %5, %6 : vector<32x128xf32>
    %cst_6 = arith.constant 0.00999999977 : f32
    %8 = vector.broadcast %cst_6 : f32 to vector<32x128xf32>
    %9 = arith.mulf %8, %5 : vector<32x128xf32>
    %10 = arith.select %7, %5, %9 : vector<32x128xi1>, vector<32x128xf32>
    %c0_7 = arith.constant 0 : index
    %c0_8 = arith.constant 0 : index
    %11 = vector.load %arg5[%c0_7, %c0_8] : memref<16x32xbf16, #tpu.memory_space<vmem>>, vector<16x32xbf16>
    %12 = arith.truncf %10 : vector<32x128xf32> to vector<32x128xbf16>
    %cst_9 = arith.constant dense<0.000000e+00> : vector<16x128xf32>
    %13 = tpu.matmul %11, %12, %cst_9 {dimension_numbers = #tpu.dot_dimension_numbers<[1], [0], [0], [1], [0, 0, 1, 1], [], []>} : vector<16x32xbf16>, vector<32x128xbf16>, vector<16x128xf32> -> vector<16x128xf32>
    %c0_10 = arith.constant 0 : index
    %c0_11 = arith.constant 0 : index
    %14 = vector.load %arg6[%c0_10, %c0_11] : memref<16x1xf32, #tpu.memory_space<vmem>>, vector<16x1xf32>
    %15 = vector.broadcast %14 : vector<16x1xf32> to vector<16x128xf32>
    %16 = arith.addf %13, %15 : vector<16x128xf32>
    %cst_12 = arith.constant 0.000000e+00 : f32
    %17 = vector.broadcast %cst_12 : f32 to vector<16x128xf32>
    %18 = arith.cmpf ogt, %16, %17 : vector<16x128xf32>
    %cst_13 = arith.constant 0.00999999977 : f32
    %19 = vector.broadcast %cst_13 : f32 to vector<16x128xf32>
    %20 = arith.mulf %19, %16 : vector<16x128xf32>
    %21 = arith.select %18, %16, %20 : vector<16x128xi1>, vector<16x128xf32>
    %c0_14 = arith.constant 0 : index
    %c0_15 = arith.constant 0 : index
    %22 = vector.load %arg7[%c0_14, %c0_15] : memref<16x1xf32, #tpu.memory_space<vmem>>, vector<16x1xf32>
    %23 = vector.broadcast %22 : vector<16x1xf32> to vector<16x128xf32>
    %24 = arith.mulf %21, %23 : vector<16x128xf32>
    %cst_16 = arith.constant dense<0.000000e+00> : vector<128xf32>
    %25 = vector.multi_reduction <add>, %24, %cst_16 [0] : vector<16x128xf32> to vector<128xf32>
    %26 = vector.shape_cast %25 : vector<128xf32> to vector<1x128xf32>
    %c0_17 = arith.constant 0 : index
    %c0_18 = arith.constant 0 : index
    %27 = vector.load %arg8[%c0_17, %c0_18] : memref<1x1xf32, #tpu.memory_space<vmem>>, vector<1x1xf32>
    %28 = vector.broadcast %27 : vector<1x1xf32> to vector<1x128xf32>
    %29 = arith.addf %26, %28 : vector<1x128xf32>
    %cst_19 = arith.constant 0.000000e+00 : f32
    %30 = vector.broadcast %cst_19 : f32 to vector<1x128xf32>
    %31 = arith.subf %30, %29 : vector<1x128xf32>
    %32 = math.exp %31 : vector<1x128xf32>
    %cst_20 = arith.constant 1.000000e+00 : f32
    %33 = vector.broadcast %cst_20 : f32 to vector<1x128xf32>
    %34 = arith.addf %33, %32 : vector<1x128xf32>
    %35 = tpu.reciprocal %34 {approx = true} : vector<1x128xf32> -> vector<1x128xf32>
    %c0_21 = arith.constant 0 : index
    %c0_22 = arith.constant 0 : index
    %36 = vector.load %arg2[%c0_21, %c0_22] : memref<1x128xf32, #tpu.memory_space<vmem>>, vector<1x128xf32>
    %37 = arith.addf %35, %36 : vector<1x128xf32>
    %c0_23 = arith.constant 0 : index
    %c0_24 = arith.constant 0 : index
    %38 = vector.load %arg9[%c0_23, %c0_24] : memref<1x128xf32, #tpu.memory_space<vmem>>, vector<1x128xf32>
    tpu.vector_store %arg9[%c0_23, %c0_24], %37 {strides = array<i32>} : memref<1x128xf32, #tpu.memory_space<vmem>>, vector<1x128xf32>,
    return
  }
  func.func @transform_0(%arg0: i32) -> (i32, i32) {
    %c0_i32 = arith.constant 0 : i32
    %c0_i32_0 = arith.constant 0 : i32
    return %c0_i32, %arg0 : i32, i32
  }
  func.func @transform_1(%arg0: i32) -> (i32, i32) {
    %c0_i32 = arith.constant 0 : i32
    %c0_i32_0 = arith.constant 0 : i32
    return %c0_i32, %arg0 : i32, i32
  }
  func.func @transform_2(%arg0: i32) -> (i32, i32) {
    %c0_i32 = arith.constant 0 : i32
    %c0_i32_0 = arith.constant 0 : i32
    %c0_i32_1 = arith.constant 0 : i32
    return %c0_i32, %c0_i32_0 : i32, i32
  }
  func.func @transform_3(%arg0: i32) -> (i32, i32) {
    %c0_i32 = arith.constant 0 : i32
    %c0_i32_0 = arith.constant 0 : i32
    %c0_i32_1 = arith.constant 0 : i32
    return %c0_i32, %c0_i32_0 : i32, i32
  }
  func.func @transform_4(%arg0: i32) -> (i32, i32) {
    %c0_i32 = arith.constant 0 : i32
    %c0_i32_0 = arith.constant 0 : i32
    %c0_i32_1 = arith.constant 0 : i32
    return %c0_i32, %c0_i32_0 : i32, i32
  }
  func.func @transform_5(%arg0: i32) -> (i32, i32) {
    %c0_i32 = arith.constant 0 : i32
    %c0_i32_0 = arith.constant 0 : i32
    %c0_i32_1 = arith.constant 0 : i32
    return %c0_i32, %c0_i32_0 : i32, i32
  }
  func.func @transform_6(%arg0: i32) -> (i32, i32) {
    %c0_i32 = arith.constant 0 : i32
    %c0_i32_0 = arith.constant 0 : i32
    %c0_i32_1 = arith.constant 0 : i32
    return %c0_i32, %c0_i32_0 : i32, i32
  }
  func.func @transform_7(%arg0: i32) -> (i32, i32) {
    %c0_i32 = arith.constant 0 : i32
    %c0_i32_0 = arith.constant 0 : i32
    %c0_i32_1 = arith.constant 0 : i32
    return %c0_i32, %c0_i32_0 : i32, i32
  }
  func.func @transform_8(%arg0: i32) -> (i32, i32) {
    %c0_i32 = arith.constant 0 : i32
    %c0_i32_0 = arith.constant 0 : i32
    return %c0_i32, %arg0 : i32, i32
  }
}

</mosaic_0001>

<bundles_post_ra>
// kernel: tpu_custom_call.1
= control target key start
LH: loop header
LB: loop body
LE: loop exit
PB: predicated region body
PF: predicated region fallthrough
CT: control target
= control target key end

     0   :  { %s491_s0 = inlined_call_operand.vmem [shape: bf16[64,128], index: 0, kind: input, shape index: {}]   ;;  %s492_s1 = inlined_call_operand.vmem [shape: f32[1,128], index: 1, kind: input, shape index: {}]   ;;  %s493_s2 = inlined_call_operand.vmem [shape: bf16[32,64], index: 2, kind: input, shape index: {}]   ;;  %s494_s3 = inlined_call_operand.vmem [shape: f32[32,1], index: 3, kind: input, shape index: {}]   ;;  %s495_s4 = inlined_call_operand.vmem [shape: bf16[16,32], index: 4, kind: input, shape index: {}]   ;;  %s496_s5 = inlined_call_operand.vmem [shape: f32[16,1], index: 5, kind: input, shape index: {}]   ;;  %s497_s6 = inlined_call_operand.vmem [shape: f32[16,1], index: 6, kind: input, shape index: {}]   ;;  %s498_s7 = inlined_call_operand.<no memory space> [shape: f32[1,1], index: 7, kind: input, shape index: {}]   ;;  %s499_s8 = inlined_call_operand.hbm [shape: f32[1,128], index: 8, kind: output, shape index: {}]  }
   0x1   :  { %v13_v0 = vstv %s498_s7 }
   0x2   :  { %14 = vst [vmem:[#allocation2] sm:$0x1] %v13_v0 }
   0x3   :  { %v342_v1 = vld [vmem:[%s491_s0] sm:$0xff]   ;;  %v343_v2 = vld [vmem:[%s491_s0 + $0x8] sm:$0xff]   ;;  %v377_v3 = vmov 0   ;;  %v344_v4 = vld [vmem:[%s491_s0 + $0x10] sm:$0xff]   ;;  %vm103_vm0 = vcmask 523264  }
   0x4   :  { %316 = vmatprep.subr.bf16.mxu0 %v342_v1  ;;  %340 = vset.pattern.permute.xlu0 %v377_v3  ;;  %v346_v5 = vld [vmem:[%s493_s2] sm:$0xff]   ;;  %v47_v7 = vld [vmem:[%s494_s3 + $0x10] sm:$0xff]  ;;  %v345_v8 = vld [vmem:[%s491_s0 + $0x18] sm:$0xff]  }
   0x5   :  { %317 = vmatpush3.bf16.msra.mxu0 %v342_v1  ;;  %341 = vset.pattern.permute.xlu1 %v377_v3  ;;  %v45_v6 = vld [vmem:[%s494_s3] sm:$0xff]  ;;  %v46_v9 = vld [vmem:[%s494_s3 + $0x8] sm:$0xff]  ;;  %v48_v10 = vld [vmem:[%s494_s3 + $0x18] sm:$0xff] }
   0x6   :  { %318 = vmatprep.subr.bf16.mxu0 %v343_v2  ;;  %324 = vmatprep.mubr.msk.bf16.mxu0 %vm103_vm0, %v346_v5 }
   0x7   :  { %51 = vperm.xlu0 %340, %v45_v6   ;;  %61 = vperm.xlu1 %341, %v47_v7  }
   0x9   :  { %319 = vmatpush3.bf16.msra.mxu0 %v343_v2 }
   0xa   :  { %320 = vmatprep.subr.bf16.mxu0 %v344_v4 }
   0xb   :  { %15 = vsyncpa [#allocation4], 0  ;;  %56 = vperm.xlu0 %340, %v46_v9   ;;  %v175_v11 = vld [vmem:[%s496_s5] sm:$0xff]  ;;  %66 = vperm.xlu1 %341, %v48_v10   ;;  %v176_v12 = vld [vmem:[%s496_s5 + $0x8] sm:$0xff]  ;;  %v378_v17 = vmov 0.0   ;;  %vm379_vm1 = vmmov 0   ;;  %v270_v57 = vlaneseq }
   0xc   :  { %v347_v13 = vld [vmem:[%s493_s2 + $0x8] sm:$0xff]   ;;  %v243_v14 = vld [vmem:[%s497_s6] sm:$0xff]  ;;  %328 = vmatprep.subr.bf16.mxu1 %v378_v17  ;;  %332 = vmatprep.mubr.msk.bf16.mxu1 %vm379_vm1, %v378_v17  ;;  %vm192_vm6 = vcmask 261120   ;;  %s380_s10 = smov [#allocation3]  }
   0xd   :  { %321 = vmatpush3.bf16.msra.mxu0 %v344_v4  ;;  %v244_v15 = vld [vmem:[%s497_s6 + $0x8] sm:$0xff]  ;;  %v264_v16 = vld [vmem:[#allocation2] sm:$0x1]  ;;  %v271_v60 = vshrl.u32 %v270_v57, 7  ;;  %s289_s11 = sshll.u32 %s380_s10, 4  ;;  %s290_s11 = int_to_ptr.vmem [resolvable:$true] %s289_s11 }
   0xe   :  { %322 = vmatprep.subr.bf16.mxu0 %v345_v8  ;;  %v348_v40 = vld [vmem:[%s495_s4] sm:$0xff]   ;;  %s353_s12 = scalar_lea.vmem %s290_s11, 16  ;;  %s357_s7 = scalar_lea.vmem %s290_s11, 32 }
   0xf   :  { %179 = vperm.xlu0 %340, %v175_v11   ;;  %184 = vperm.xlu1 %341, %v176_v12   ;;  %v272_v63 = vsub.s32 0, %v271_v60  ;;  %v280_v10 = vld [vmem:[%s492_s1] sm:$0x1]  ;;  %p354_p0 = scmp.ne.s32.totalorder %s290_s11, %s353_s12  ;;  %p358_p1 = scmp.lt.s32.totalorder %s290_s11, %s290_s11 }
  0x10   :  { %p359_p2 = scmp.lt.s32.totalorder %s357_s7, %s353_s12 }
  0x11   :  { %323 = vmatpush3.bf16.msra.mxu0 %v345_v8 }
  0x12   :  { %p360_p3 = por %p359_p2, %p358_p1 }
  0x13   :  { %247 = vperm.xlu0 %340, %v243_v14   ;;  %252 = vperm.xlu1 %341, %v244_v15  }
  0x14   :  { %325 = vmatmul.mubr.msk.bf16.vlgmr.msra.gmra.mrb[0].mxu0 %vm103_vm0, %v347_v13  ;;  %p361_p4 = pnand %p360_p3, %p354_p0 }
  0x17   :  { %267 = vperm.xlu0 %340, %v264_v16  }
  0x86   :  { %v62_v18 = vpop.permute.xlu1 %61  ;;  %v52_v19 = vpop.permute.xlu0 %51 }
  0x8a   :  { %v67_v23 = vpop.permute.xlu1 %66  ;;  %v57_v26 = vpop.permute.xlu0 %56 }
  0x8e   :  { %v180_v41 = vpop.permute.xlu0 %179  ;;  %v185_v43 = vpop.permute.xlu1 %184 }
  0x92   :  { %v248_v52 = vpop.permute.xlu0 %247  ;;  %v253_v53 = vpop.permute.xlu1 %252 }
  0x96   :  { %v268_v1 = vpop.permute.xlu0 %267 }
  0x97   :  { %v273_v3 = vrot.slane %v268_v1, %v272_v63 }
  0xe7   :  { %v326_v20 = vpop.f32.mrb[0].mxu0 }
  0xe8   :  { %v153_v21 = vadd.f32 %v326_v20, %v62_v18  ;;  %v144_v22 = vpop.f32.mrb[1].mxu0 }
  0xe9   :  { %v145_v24 = vadd.f32 %v144_v22, %v52_v19  ;;  %v327_v25 = vpop.f32.mrb[2].mxu0 }
  0xea   :  { %v165_v27 = vmul.f32 0.01, %v153_v21  ;;  %v156_v28 = vadd.f32 %v327_v25, %v67_v23  ;;  %v147_v29 = vpop.f32.mrb[3].mxu0  ;;  %vm161_vm2 = vcmp.gt.f32.partialorder %v153_v21, 0.0 }
  0xeb   :  { %v163_v30 = vmul.f32 0.01, %v145_v24  ;;  %v148_v31 = vadd.f32 %v147_v29, %v57_v26  ;;  %vm159_vm4 = vcmp.gt.f32.partialorder %v145_v24, 0.0 }
  0xec   :  { %vm162_vm3 = vcmp.gt.f32.partialorder %v156_v28, 0.0  ;;  %v166_v32 = vmul.f32 0.01, %v156_v28  ;;  %v169_v34 = vsel %vm161_vm2, %v153_v21, %v165_v27 }
  0xed   :  { %v164_v33 = vmul.f32 0.01, %v148_v31  ;;  %vm160_vm5 = vcmp.gt.f32.partialorder %v148_v31, 0.0  ;;  %v167_v36 = vsel %vm159_vm4, %v145_v24, %v163_v30 }
  0xee   :  { %v170_v35 = vsel %vm162_vm3, %v156_v28, %v166_v32 }
  0xef   :  { %v168_v37 = vsel %vm160_vm5, %v148_v31, %v164_v33  ;;  %v174_v38 = vpack.c.bf16 %v170_v35, %v169_v34 }
  0xf0   :  { %v173_v39 = vpack.c.bf16 %v168_v37, %v167_v36 }
  0xf2   :  { %329 = vmatpush3.bf16.msra.mxu1 %v173_v39 }
  0xf3   :  { %330 = vmatprep.subr.bf16.mxu1 %v378_v17 }
  0xf6   :  { %331 = vmatpush3.bf16.msra.mxu1 %v174_v38 }
  0xf9   :  { %333 = vmatmul.mubr.msk.bf16.vlgmr.msra.gmra.mrb[0].mxu1 %vm192_vm6, %v348_v40 }
 0x1cc   :  { %v230_v42 = vpop.f32.mrb[0].mxu1 }
 0x1cd   :  { %v231_v44 = vadd.f32 %v230_v42, %v180_v41  ;;  %v334_v45 = vpop.f32.mrb[1].mxu1 }
 0x1ce   :  { %v233_v46 = vpop.f32.mrb[2].mxu1 }
 0x1cf   :  { %vm237_vm7 = vcmp.gt.f32.partialorder %v231_v44, 0.0  ;;  %v239_v47 = vmul.f32 0.01, %v231_v44  ;;  %v234_v48 = vadd.f32 %v233_v46, %v185_v43  ;;  %v335_v49 = vpop.f32.mrb[3].mxu1 }
 0x1d1   :  { %v241_v50 = vsel %vm237_vm7, %v231_v44, %v239_v47  ;;  %vm238_vm8 = vcmp.gt.f32.partialorder %v234_v48, 0.0  ;;  %v240_v51 = vmul.f32 0.01, %v234_v48 }
 0x1d2   :  { %v255_v55 = vmul.f32 %v248_v52, %v241_v50 }
 0x1d3   :  { %v242_v54 = vsel %vm238_vm8, %v234_v48, %v240_v51 }
 0x1d4   :  { %v256_v56 = vmul.f32 %v253_v53, %v242_v54 }
 0x1d6   :  { %v257_v58 = vadd.f32 %v256_v56, %v255_v55 }
 0x1d8   :  { %v258_v59 = vrot.slane %v257_v58, 4 }
 0x1da   :  { %v259_v61 = vadd.f32 %v258_v59, %v257_v58 }
 0x1dc   :  { %v260_v62 = vrot.slane %v259_v61, 2 }
 0x1de   :  { %v261_v0 = vadd.f32 %v260_v62, %v259_v61 }
 0x1e0   :  { %v262_v2 = vrot.slane %v261_v0, 1 }
 0x1e2   :  { %v263_v4 = vadd.f32 %v262_v2, %v261_v0 }
 0x1e4   :  { %v274_v5 = vadd.f32 %v273_v3, %v263_v4 }
 0x1e6   :  { %v275_v6 = vsub.f32 0.0, %v274_v5 }
 0x1e8   :  { %v276_v7 = vmul.f32 1.442695, %v275_v6 }
 0x1ea   :  { %349 = vpow2.f32 %v276_v7 }
 0x1f4   :  { %v350_v8 = vpop.eup %349 }
 0x1f5   :  { %v278_v9 = vadd.f32 1.0, %v350_v8 }
 0x1f7   :  { %351 = vrcp.f32 %v278_v9 }
 0x201   :  { %v352_v11 = vpop.eup %351 }
 0x202   :  { %v281_v12 = vadd.f32 %v352_v11, %v280_v10 }
 0x204   :  { %282 = vst [vmem:[#allocation3] sm:$0x1] %v281_v12 }
 0x205   :  { %364 = shalt.err (!%p361_p4)
}
 0x206   :  { %s365_s15 = scalar_lea.hbm %s499_s8, 16 }
 0x207   :  { %p366_p5 = scmp.ne.s32.totalorder %s499_s8, %s365_s15  ;;  %p369_p6 = scmp.lt.u32.totalorder %s365_s15, %s499_s8 }
 0x209   :  { %p371_p7 = pnand %p369_p6, %p366_p5 }
 0x20b   :  { %374 = shalt.err (!%p371_p7)
}
 0x20c   :  { %292 = dma.vmem_to_hbm [thread:$0]  %s290_s11, 16, %s499_s8, [#allocation4]  }
 0x20d   :  { %375 = dma.done.wait [#allocation4], 16  }
 0x20e   :  { %376 = vsyncadd [#allocation4], 4294967280 }
 0x20f   :  { %296 = vsyncpa [#allocation4], 1 }

</bundles_post_ra>
